<compile_context>
chip_gen: v5e
topology: v5e:2x2
jax: 0.10.0
libtpu: 0.0.40
codegen_flags: <defaults>
</compile_context>

<pallas_src>
import functools

import jax
import jax.numpy as jnp
from jax import lax
from jax.experimental import pallas as pl
from jax.experimental.pallas import tpu as pltpu


def _mlp_kernel(x_ref, w1_ref, b1_ref, w2_ref, b2_ref, w3_ref, b3_ref, o_ref,
                *, precision):
    # Cast the streamed f32 x tile to the compute dtype here (VPU op, hidden
    # under the DMA) instead of in the wrapper (which would add an HBM pass).
    x = x_ref[...].astype(w1_ref.dtype)
    # Layer 1: Linear + ReLU. MXU matmul with f32 accumulation; bias/ReLU in f32.
    h = jnp.dot(x, w1_ref[...], preferred_element_type=jnp.float32,
                precision=precision)
    h = jnp.maximum(h + b1_ref[...], 0.0)
    # Layer 2: Linear + ReLU.
    h = jnp.dot(h.astype(w2_ref.dtype), w2_ref[...],
                preferred_element_type=jnp.float32, precision=precision)
    h = jnp.maximum(h + b2_ref[...], 0.0)
    # Output layer (no activation), stored at its true (narrow) width.
    out = jnp.dot(h.astype(w3_ref.dtype), w3_ref[...],
                  preferred_element_type=jnp.float32, precision=precision)
    o_ref[...] = (out + b3_ref[...]).astype(o_ref.dtype)


def prepare_params(params, compute_dtype=jnp.bfloat16):
    """One-time weight prep: weights -> compute dtype, biases -> f32.

    Doing this outside the per-call path keeps x and the output as the only
    per-call HBM traffic (the casts are tiny but would otherwise run as
    separate XLA ops on every call).
    """
    prepared = {}
    for i in (1, 2, 3):
        prepared[f"w{i}"] = params[f"w{i}"].astype(compute_dtype)
        prepared[f"b{i}"] = params[f"b{i}"].astype(jnp.float32)
    return prepared


def _batch_tile(B, tile_b):
    """Pick the batch tile: big tiles to amortize per-grid-step overhead, and
    >=2 grid steps (when cheaply possible) so v7x shards across its 2 TCs."""
    if B > tile_b:
        return tile_b
    # Whole batch fits in one tile. If it is large enough, split into two
    # 8-row-aligned tiles so the "parallel" axis can use both v7x TensorCores.
    if B >= 512 and (B // 2) % 8 == 0:
        return B // 2
    return B


def feedforward_nn(x, params, *, tile_b=4096, compute_dtype=jnp.bfloat16,
                   out_dtype=jnp.float32):
    """Fused 3-layer MLP forward: ReLU(ReLU(x@w1+b1)@w2+b2)@w3+b3.

    x: [B, D] float32 (streamed; cast to compute_dtype inside the kernel)
    params: dict with w1 [D, H1], b1 [1, H1], w2 [H1, H2], b2 [1, H2],
            w3 [H2, O], b3 [1, O]  (weights stored [in, out] so x @ W + b).
            Ideally already produced by prepare_params().
    Returns [B, O] in out_dtype (pass out_dtype=jnp.bfloat16 to halve output
    writeback bytes if downstream consumers accept it).
    """
    B, D = x.shape
    H1 = params["w1"].shape[1]
    H2 = params["w2"].shape[1]
    O = params["w3"].shape[1]

    # No-ops if the caller already ran prepare_params() with this dtype.
    w1 = params["w1"].astype(compute_dtype)
    w2 = params["w2"].astype(compute_dtype)
    w3 = params["w3"].astype(compute_dtype)
    b1 = params["b1"].astype(jnp.float32)
    b2 = params["b2"].astype(jnp.float32)
    b3 = params["b3"].astype(jnp.float32)

    tb = _batch_tile(B, tile_b)
    grid = (pl.cdiv(B, tb),)

    # Strict-correctness mode: f32 compute uses full-precision MXU passes so a
    # tight tolerance vs. a true-f32 reference holds at any D.
    precision = (lax.Precision.HIGHEST
                 if jnp.dtype(compute_dtype) == jnp.float32
                 else lax.Precision.DEFAULT)

    w_itemsize = jnp.dtype(compute_dtype).itemsize
    cost = pl.CostEstimate(
        flops=2 * B * (D * H1 + H1 * H2 + H2 * O),
        transcendentals=0,
        bytes_accessed=int(
            B * D * x.dtype.itemsize                       # x stream (dominant)
            + B * O * jnp.dtype(out_dtype).itemsize        # output stream
            + (D * H1 + H1 * H2 + H2 * O) * w_itemsize     # weights (once)
            + (H1 + H2 + O) * 4                            # biases
        ),
    )

    return pl.pallas_call(
        functools.partial(_mlp_kernel, precision=precision),
        out_shape=jax.ShapeDtypeStruct((B, O), out_dtype),
        grid_spec=pltpu.PrefetchScalarGridSpec(
            num_scalar_prefetch=0,
            grid=grid,
            in_specs=[
                pl.BlockSpec((tb, D), lambda i: (i, 0)),    # x tile over batch
                pl.BlockSpec((D, H1), lambda i: (0, 0)),    # w1 (resident)
                pl.BlockSpec((1, H1), lambda i: (0, 0)),    # b1
                pl.BlockSpec((H1, H2), lambda i: (0, 0)),   # w2
                pl.BlockSpec((1, H2), lambda i: (0, 0)),    # b2
                pl.BlockSpec((H2, O), lambda i: (0, 0)),    # w3 (true width)
                pl.BlockSpec((1, O), lambda i: (0, 0)),     # b3 (true width)
            ],
            out_specs=pl.BlockSpec((tb, O), lambda i: (i, 0)),
        ),
        compiler_params=pltpu.CompilerParams(
            dimension_semantics=("parallel",),
            # Explicit scoped-VMEM budget so tb=4096 behaves identically on
            # v5e (16 MiB default) / v6e (32 MiB) / v7x (64 MiB physical).
            vmem_limit_bytes=48 * 1024 * 1024,
        ),
        cost_estimate=cost,
    )(x, w1, b1, w2, b2, w3, b3)


def init_params(key, input_dim, output_dim, hidden_layers=(64, 32)):
    """Deterministic synthetic init (PyTorch-like uniform fan-in scaling)."""
    dims = [input_dim, *hidden_layers, output_dim]
    params = {}
    for idx in range(len(dims) - 1):
        fan_in, fan_out = dims[idx], dims[idx + 1]
        key, kw, kb = jax.random.split(key, 3)
        bound = 1.0 / (fan_in ** 0.5)
        # Stored as [in, out] so the kernel computes x @ W + b.
        w = jax.random.uniform(kw, (fan_in, fan_out), jnp.float32, -bound, bound)
        b = jax.random.uniform(kb, (1, fan_out), jnp.float32, -bound, bound)
        params[f"w{idx + 1}"] = w
        params[f"b{idx + 1}"] = b
    return params


def reference_forward(x, params):
    # True-f32 reference (HIGHEST precision ≈ PyTorch f32 matmul semantics).
    hp = lax.Precision.HIGHEST
    h = jnp.maximum(jnp.dot(x, params["w1"], precision=hp) + params["b1"], 0.0)
    h = jnp.maximum(jnp.dot(h, params["w2"], precision=hp) + params["b2"], 0.0)
    return jnp.dot(h, params["w3"], precision=hp) + params["b3"]


if __name__ == "__main__":
    key = jax.random.PRNGKey(0)
    key, kx = jax.random.split(key)

    # Small demo shapes consistent with the module (B=8, D=16, O=4).
    # Note: at these sizes a pallas_call is pure overhead vs fused XLA matmuls;
    # this kernel targets large B (thousands+ of rows), where it is HBM-bound.
    batch, input_dim, output_dim = 8, 16, 4
    hidden_layers = (64, 32)

    x = jax.random.normal(kx, (batch, input_dim), jnp.float32)
    params = init_params(key, input_dim, output_dim, hidden_layers)
    ref = reference_forward(x, params)

    # Strict-correctness path: f32 compute, HIGHEST-precision MXU passes.
    out_f32 = jax.block_until_ready(
        feedforward_nn(x, params, compute_dtype=jnp.float32))
    assert out_f32.shape == (batch, output_dim)
    assert jnp.allclose(out_f32, ref, atol=1e-4, rtol=1e-4), "f32 mismatch vs reference"

    # Performance path: bf16 weights (prepared once), x cast to bf16 in-kernel.
    prepared = prepare_params(params)
    out_bf16 = jax.block_until_ready(feedforward_nn(x, prepared))
    assert out_bf16.shape == (batch, output_dim)
    assert jnp.allclose(out_bf16, ref, atol=3e-2, rtol=3e-2), "bf16 mismatch vs reference"

    print("KERNEL_OK")
</pallas_src>

<mosaic_0001>
module attributes {stable_mosaic.version = 11 : i64} {
  func.func @_mlp_kernel(%arg0: i32, %arg1: memref<8x16xf32, #tpu.memory_space<vmem>>, %arg2: memref<16x64xf32, #tpu.memory_space<vmem>>, %arg3: memref<1x64xf32, #tpu.memory_space<vmem>>, %arg4: memref<64x32xf32, #tpu.memory_space<vmem>>, %arg5: memref<1x32xf32, #tpu.memory_space<vmem>>, %arg6: memref<32x4xf32, #tpu.memory_space<vmem>>, %arg7: memref<1x4xf32, #tpu.memory_space<vmem>>, %arg8: memref<8x4xf32, #tpu.memory_space<vmem>>) attributes {dimension_semantics = [#tpu.dimension_semantics<parallel>], iteration_bounds = array<i64: 1>, scalar_prefetch = 0 : i64, scratch_operands = 0 : i64, tpu.core_type = #tpu.core_type<tc>, window_params = [{transform_indices = @transform_0, window_bounds = array<i64: 8, 16>}, {pipeline_mode = #tpu.pipeline_mode<synchronous>, transform_indices = @transform_1, window_bounds = array<i64: 16, 64>}, {pipeline_mode = #tpu.pipeline_mode<synchronous>, transform_indices = @transform_2, window_bounds = array<i64: 1, 64>}, {pipeline_mode = #tpu.pipeline_mode<synchronous>, transform_indices = @transform_3, window_bounds = array<i64: 64, 32>}, {pipeline_mode = #tpu.pipeline_mode<synchronous>, transform_indices = @transform_4, window_bounds = array<i64: 1, 32>}, {pipeline_mode = #tpu.pipeline_mode<synchronous>, transform_indices = @transform_5, window_bounds = array<i64: 32, 4>}, {pipeline_mode = #tpu.pipeline_mode<synchronous>, transform_indices = @transform_6, window_bounds = array<i64: 1, 4>}, {transform_indices = @transform_7, window_bounds = array<i64: 8, 4>}]} {
    %c0 = arith.constant 0 : index
    %c0_0 = arith.constant 0 : index
    %0 = vector.load %arg1[%c0, %c0_0] : memref<8x16xf32, #tpu.memory_space<vmem>>, vector<8x16xf32>
    %c0_1 = arith.constant 0 : index
    %c0_2 = arith.constant 0 : index
    %1 = vector.load %arg2[%c0_1, %c0_2] : memref<16x64xf32, #tpu.memory_space<vmem>>, vector<16x64xf32>
    %cst = arith.constant dense<0.000000e+00> : vector<8x64xf32>
    %2 = tpu.matmul %0, %1, %cst {dimension_numbers = #tpu.dot_dimension_numbers<[1], [0], [0], [1], [0, 0, 1, 1], [], []>, precision = #tpu.contract_precision<fp32>} : vector<8x16xf32>, vector<16x64xf32>, vector<8x64xf32> -> vector<8x64xf32>
    %c0_3 = arith.constant 0 : index
    %c0_4 = arith.constant 0 : index
    %3 = vector.load %arg3[%c0_3, %c0_4] : memref<1x64xf32, #tpu.memory_space<vmem>>, vector<1x64xf32>
    %4 = vector.broadcast %3 : vector<1x64xf32> to vector<8x64xf32>
    %5 = arith.addf %2, %4 : vector<8x64xf32>
    %cst_5 = arith.constant 0.000000e+00 : f32
    %6 = vector.broadcast %cst_5 : f32 to vector<8x64xf32>
    %7 = arith.maximumf %5, %6 : vector<8x64xf32>
    %c0_6 = arith.constant 0 : index
    %c0_7 = arith.constant 0 : index
    %8 = vector.load %arg4[%c0_6, %c0_7] : memref<64x32xf32, #tpu.memory_space<vmem>>, vector<64x32xf32>
    %cst_8 = arith.constant dense<0.000000e+00> : vector<8x32xf32>
    %9 = tpu.matmul %7, %8, %cst_8 {dimension_numbers = #tpu.dot_dimension_numbers<[1], [0], [0], [1], [0, 0, 1, 1], [], []>, precision = #tpu.contract_precision<fp32>} : vector<8x64xf32>, vector<64x32xf32>, vector<8x32xf32> -> vector<8x32xf32>
    %c0_9 = arith.constant 0 : index
    %c0_10 = arith.constant 0 : index
    %10 = vector.load %arg5[%c0_9, %c0_10] : memref<1x32xf32, #tpu.memory_space<vmem>>, vector<1x32xf32>
    %11 = vector.broadcast %10 : vector<1x32xf32> to vector<8x32xf32>
    %12 = arith.addf %9, %11 : vector<8x32xf32>
    %cst_11 = arith.constant 0.000000e+00 : f32
    %13 = vector.broadcast %cst_11 : f32 to vector<8x32xf32>
    %14 = arith.maximumf %12, %13 : vector<8x32xf32>
    %c0_12 = arith.constant 0 : index
    %c0_13 = arith.constant 0 : index
    %15 = vector.load %arg6[%c0_12, %c0_13] : memref<32x4xf32, #tpu.memory_space<vmem>>, vector<32x4xf32>
    %cst_14 = arith.constant dense<0.000000e+00> : vector<8x4xf32>
    %16 = tpu.matmul %14, %15, %cst_14 {dimension_numbers = #tpu.dot_dimension_numbers<[1], [0], [0], [1], [0, 0, 1, 1], [], []>, precision = #tpu.contract_precision<fp32>} : vector<8x32xf32>, vector<32x4xf32>, vector<8x4xf32> -> vector<8x4xf32>
    %c0_15 = arith.constant 0 : index
    %c0_16 = arith.constant 0 : index
    %17 = vector.load %arg7[%c0_15, %c0_16] : memref<1x4xf32, #tpu.memory_space<vmem>>, vector<1x4xf32>
    %18 = vector.broadcast %17 : vector<1x4xf32> to vector<8x4xf32>
    %19 = arith.addf %16, %18 : vector<8x4xf32>
    %c0_17 = arith.constant 0 : index
    %c0_18 = arith.constant 0 : index
    %20 = vector.load %arg8[%c0_17, %c0_18] : memref<8x4xf32, #tpu.memory_space<vmem>>, vector<8x4xf32>
    tpu.vector_store %arg8[%c0_17, %c0_18], %19 {strides = array<i32>} : memref<8x4xf32, #tpu.memory_space<vmem>>, vector<8x4xf32>,
    return
  }
  func.func @transform_0(%arg0: i32) -> (i32, i32) {
    %c0_i32 = arith.constant 0 : i32
    %c0_i32_0 = arith.constant 0 : i32
    return %arg0, %c0_i32 : i32, i32
  }
  func.func @transform_1(%arg0: i32) -> (i32, i32) {
    %c0_i32 = arith.constant 0 : i32
    %c0_i32_0 = arith.constant 0 : i32
    %c0_i32_1 = arith.constant 0 : i32
    return %c0_i32, %c0_i32_0 : i32, i32
  }
  func.func @transform_2(%arg0: i32) -> (i32, i32) {
    %c0_i32 = arith.constant 0 : i32
    %c0_i32_0 = arith.constant 0 : i32
    %c0_i32_1 = arith.constant 0 : i32
    return %c0_i32, %c0_i32_0 : i32, i32
  }
  func.func @transform_3(%arg0: i32) -> (i32, i32) {
    %c0_i32 = arith.constant 0 : i32
    %c0_i32_0 = arith.constant 0 : i32
    %c0_i32_1 = arith.constant 0 : i32
    return %c0_i32, %c0_i32_0 : i32, i32
  }
  func.func @transform_4(%arg0: i32) -> (i32, i32) {
    %c0_i32 = arith.constant 0 : i32
    %c0_i32_0 = arith.constant 0 : i32
    %c0_i32_1 = arith.constant 0 : i32
    return %c0_i32, %c0_i32_0 : i32, i32
  }
  func.func @transform_5(%arg0: i32) -> (i32, i32) {
    %c0_i32 = arith.constant 0 : i32
    %c0_i32_0 = arith.constant 0 : i32
    %c0_i32_1 = arith.constant 0 : i32
    return %c0_i32, %c0_i32_0 : i32, i32
  }
  func.func @transform_6(%arg0: i32) -> (i32, i32) {
    %c0_i32 = arith.constant 0 : i32
    %c0_i32_0 = arith.constant 0 : i32
    %c0_i32_1 = arith.constant 0 : i32
    return %c0_i32, %c0_i32_0 : i32, i32
  }
  func.func @transform_7(%arg0: i32) -> (i32, i32) {
    %c0_i32 = arith.constant 0 : i32
    %c0_i32_0 = arith.constant 0 : i32
    return %arg0, %c0_i32 : i32, i32
  }
}

</mosaic_0001>

<bundles_post_ra>
// kernel: tpu_custom_call.1
= control target key start
LH: loop header
LB: loop body
LE: loop exit
PB: predicated region body
PF: predicated region fallthrough
CT: control target
= control target key end

     0   :  { %vm33_vm0 = vcmask 130048   ;;  %vm209_vm1 = vcmask 523264   ;;  %vm459_vm2 = vcmask 261120   ;;  %vm648_vm3 = vcmask 31744   ;;  %s796_s1 = inlined_call_operand.vmem [shape: f32[16,64], index: 1, kind: input, shape index: {}]   ;;  %s797_s0 = inlined_call_operand.vmem [shape: f32[8,16], index: 0, kind: input, shape index: {}]   ;;  %s798_s3 = inlined_call_operand.vmem [shape: f32[64,32], index: 3, kind: input, shape index: {}]   ;;  %s799_s2 = inlined_call_operand.vmem [shape: f32[1,64], index: 2, kind: input, shape index: {}]   ;;  %s800_s4 = inlined_call_operand.vmem [shape: f32[1,32], index: 4, kind: input, shape index: {}]   ;;  %s801_s5 = inlined_call_operand.vmem [shape: f32[32,4], index: 5, kind: input, shape index: {}]   ;;  %s802_s6 = inlined_call_operand.vmem [shape: f32[1,4], index: 6, kind: input, shape index: {}]   ;;  %s803_s7 = inlined_call_operand.vmem [shape: f32[8,4], index: 7, kind: output, shape index: {}]  }
   0x1   :  { %v28_v0 = vld [vmem:[%s796_s1 + $0x8] sm:$0xff]  ;;  %v27_v1 = vld [vmem:[%s796_s1] sm:$0xff]  ;;  %v204_v6 = vld [vmem:[%s798_s3 + $0x38] sm:$0xff] }
   0x2   :  { %v26_v2 = vld [vmem:[%s797_s0] sm:$0xff]  ;;  %v51_v3 = vand.u32 4294901760, %v28_v0  ;;  %v53_v4 = vand.u32 4294901760, %v27_v1  ;;  %v203_v7 = vld [vmem:[%s798_s3 + $0x30] sm:$0xff]  ;;  %v712_v9 = vand.u32 4294901760, %v204_v6  ;;  %v202_v31 = vld [vmem:[%s798_s3 + $0x28] sm:$0xff] }
   0x3   :  { %v35_v5 = vsel %vm33_vm0, %v26_v2, 0  ;;  %v714_v10 = vand.u32 4294901760, %v203_v7  ;;  %v739_v32 = vand.u32 4294901760, %v202_v31  ;;  %v201_v33 = vld [vmem:[%s798_s3 + $0x20] sm:$0xff]  ;;  %v200_v36 = vld [vmem:[%s798_s3 + $0x18] sm:$0xff]  ;;  %v199_v40 = vld [vmem:[%s798_s3 + $0x10] sm:$0xff] }
   0x4   :  { %v55_v8 = vand.u32 4294901760, %v35_v5  ;;  %v79_v11 = vsub.f32 %v28_v0, %v51_v3  ;;  %52 = vmatpush.msra.mxu0 %v51_v3  ;;  %v85_v12 = vsub.f32 %v27_v1, %v53_v4  ;;  %136 = vmatpush.msra.mxu3 %v51_v3  ;;  %v717_v14 = vsub.f32 %v204_v6, %v712_v9  ;;  %v198_v45 = vld [vmem:[%s798_s3 + $0x8] sm:$0xff]  ;;  %v197_v51 = vld [vmem:[%s798_s3] sm:$0xff] }
   0x5   :  { %v720_v15 = vsub.f32 %v203_v7, %v714_v10  ;;  %v267_v34 = vsub.f32 %v202_v31, %v739_v32  ;;  %v745_v35 = vand.u32 4294901760, %v201_v33  ;;  %v229_v39 = vand.u32 4294901760, %v200_v36 }
   0x6   :  { %v56_v13 = vsub.f32 %v35_v5, %v55_v8  ;;  %111 = vmatpush.msra.mxu2 %v79_v11  ;;  %54 = vmatpush.msra.mxu0 %v53_v4  ;;  %v80_v16 = vand.u32 4294901760, %v79_v11  ;;  %v86_v17 = vand.u32 4294901760, %v85_v12  ;;  %v256_v19 = vand.u32 4294901760, %v717_v14 }
   0x7   :  { %138 = vmatpush.msra.mxu3 %v53_v4  ;;  %v262_v20 = vand.u32 4294901760, %v720_v15  ;;  %v268_v37 = vand.u32 4294901760, %v267_v34  ;;  %v273_v38 = vsub.f32 %v201_v33, %v745_v35  ;;  %v279_v43 = vsub.f32 %v200_v36, %v229_v39 }
   0x8   :  { %v57_v18 = vand.u32 4294901760, %v56_v13  ;;  %114 = vmatpush.msra.mxu2 %v85_v12  ;;  %v81_v21 = vsub.f32 %v79_v11, %v80_v16  ;;  %163 = vmatpush.msrb.mxu0 %v80_v16  ;;  %v87_v22 = vsub.f32 %v85_v12, %v86_v17  ;;  %v257_v24 = vsub.f32 %v717_v14, %v256_v19 }
   0x9   :  { %117 = vmatmul.f32.vlgmr.msra.gmra.mxu2 %v56_v13  ;;  %v263_v25 = vsub.f32 %v720_v15, %v262_v20  ;;  %v269_v41 = vsub.f32 %v267_v34, %v268_v37  ;;  %v274_v42 = vand.u32 4294901760, %v273_v38  ;;  %v231_v44 = vand.u32 4294901760, %v199_v40 }
   0xa   :  { %v58_v23 = vsub.f32 %v56_v13, %v57_v18  ;;  %142 = vmatmul.f32.vlgmr.msra.gmra.mxu3 %v57_v18  ;;  %v82_v26 = vand.u32 4294901760, %v81_v21  ;;  %v88_v27 = vand.u32 4294901760, %v87_v22  ;;  %167 = vmatpush.msrb.mxu0 %v86_v17  ;;  %v258_v29 = vand.u32 4294901760, %v257_v24 }
   0xb   :  { %222 = vmatpush.msrb.mxu2 %v712_v9  ;;  %v264_v30 = vand.u32 4294901760, %v263_v25  ;;  %v270_v46 = vand.u32 4294901760, %v269_v41  ;;  %v275_v47 = vsub.f32 %v273_v38, %v274_v42  ;;  %v280_v48 = vand.u32 4294901760, %v279_v43  ;;  %v453_v25 = vld [vmem:[%s801_s5 + $0x10] sm:$0xff] }
   0xc   :  { %v59_v28 = vand.u32 4294901760, %v58_v23  ;;  %83 = vmatpush.msra.mxu1 %v82_v26  ;;  %259 = vmatpush.msrb.mxu3 %v258_v29  ;;  %v285_v49 = vsub.f32 %v199_v40, %v231_v44  ;;  %v233_v50 = vand.u32 4294901760, %v198_v45  ;;  %v235_v55 = vand.u32 4294901760, %v197_v51  ;;  %v454_v23 = vld [vmem:[%s801_s5 + $0x18] sm:$0xff] }
   0xd   :  { %224 = vmatpush.msrb.mxu2 %v714_v10  ;;  %v276_v52 = vand.u32 4294901760, %v275_v47  ;;  %v281_v53 = vsub.f32 %v279_v43, %v280_v48  ;;  %v475_v24 = vand.u32 4294901760, %v454_v23  ;;  %v655_v47 = vld [vmem:[%s800_s4] ss:$0 sm:$0xff] }
   0xe   :  { %60 = vmatmul.f32.vlgmr.msra.gmra.mxu0 %v59_v28  ;;  %89 = vmatpush.msra.mxu1 %v88_v27  ;;  %v286_v54 = vand.u32 4294901760, %v285_v49  ;;  %v291_v56 = vsub.f32 %v198_v45, %v233_v50  ;;  %v297_v59 = vsub.f32 %v197_v51, %v235_v55  ;;  %v477_v27 = vand.u32 4294901760, %v453_v25  ;;  %v452_v28 = vld [vmem:[%s801_s5 + $0x8] sm:$0xff] }
   0xf   :  { %317 = vmatpush.msra.mxu0 %v717_v14  ;;  %91 = vmatmul.f32.vlgmr.msra.gmra.mxu1 %v55_v8  ;;  %v282_v57 = vand.u32 4294901760, %v281_v53  ;;  %v505_v26 = vsub.f32 %v454_v23, %v475_v24  ;;  %v479_v31 = vand.u32 4294901760, %v452_v28 }
  0x10   :  { %265 = vmatpush.msrb.mxu3 %v264_v30  ;;  %188 = vmatpush.msrb.mxu1 %v51_v3  ;;  %v287_v58 = vsub.f32 %v285_v49, %v286_v54  ;;  %v292_v60 = vand.u32 4294901760, %v291_v56  ;;  %v298_v62 = vand.u32 4294901760, %v297_v59  ;;  %v654_v3 = vld [vmem:[%s799_s2] ss:$0 sm:$0xff]  ;;  %v511_v30 = vsub.f32 %v453_v25, %v477_v27 }
  0x11   :  { %320 = vmatpush.msra.mxu0 %v720_v15  ;;  %226 = vmatpush.msrb.mxu2 %v739_v32  ;;  %v506_v29 = vand.u32 4294901760, %v505_v26 }
  0x12   :  { %190 = vmatpush.msrb.mxu1 %v53_v4  ;;  %271 = vmatpush.msrb.mxu3 %v270_v46  ;;  %v288_v61 = vand.u32 4294901760, %v287_v58  ;;  %v293_v63 = vsub.f32 %v291_v56, %v292_v60  ;;  %v299_v0 = vsub.f32 %v297_v59, %v298_v62 }
  0x13   :  { %323 = vmatpush.msra.mxu0 %v267_v34  ;;  %228 = vmatpush.msrb.mxu2 %v745_v35  ;;  %v507_v33 = vsub.f32 %v505_v26, %v506_v29  ;;  %v512_v34 = vand.u32 4294901760, %v511_v30 }
  0x14   :  { %354 = vmatpush.msra.mxu1 %v712_v9  ;;  %277 = vmatpush.msrb.mxu3 %v276_v52  ;;  %v294_v1 = vand.u32 4294901760, %v293_v63  ;;  %v300_v2 = vand.u32 4294901760, %v299_v0 }
  0x15   :  { %326 = vmatpush.msra.mxu0 %v273_v38  ;;  %230 = vmatpush.msrb.mxu2 %v229_v39  ;;  %v513_v38 = vsub.f32 %v511_v30, %v512_v34 }
  0x16   :  { %169 = vmatmul.f32.vlgmr.msrb.gmra.mxu0 %v55_v8  ;;  %356 = vmatpush.msra.mxu1 %v714_v10 }
  0x17   :  { %192 = vmatmul.f32.vlgmr.msrb.gmra.mxu1 %v55_v8  ;;  %329 = vmatpush.msra.mxu0 %v279_v43  ;;  %v514_v41 = vand.u32 4294901760, %v513_v38 }
  0x18   :  { %358 = vmatpush.msra.mxu1 %v739_v32  ;;  %232 = vmatpush.msrb.mxu2 %v231_v44 }
  0x19   :  { %332 = vmatpush.msra.mxu0 %v285_v49  ;;  %283 = vmatpush.msrb.mxu3 %v282_v57 }
  0x1a   :  { %360 = vmatpush.msra.mxu1 %v745_v35  ;;  %234 = vmatpush.msrb.mxu2 %v233_v50 }
  0x1b   :  { %335 = vmatpush.msra.mxu0 %v291_v56  ;;  %289 = vmatpush.msrb.mxu3 %v288_v61 }
  0x1c   :  { %362 = vmatpush.msra.mxu1 %v229_v39  ;;  %236 = vmatpush.msrb.mxu2 %v235_v55 }
  0x1d   :  { %338 = vmatpush.msra.mxu0 %v297_v59  ;;  %295 = vmatpush.msrb.mxu3 %v294_v1 }
  0x1e   :  { %364 = vmatpush.msra.mxu1 %v231_v44  ;;  %387 = vmatpush.msra.mxu2 %v256_v19 }
  0x1f   :  { %301 = vmatpush.msrb.mxu3 %v300_v2  ;;  %476 = vmatpush.msrb.mxu0 %v475_v24 }
  0x20   :  { %366 = vmatpush.msra.mxu1 %v233_v50  ;;  %391 = vmatpush.msra.mxu2 %v262_v20 }
  0x21   :  { %430 = vmatpush.msra.mxu3 %v712_v9  ;;  %478 = vmatpush.msrb.mxu0 %v477_v27 }
  0x22   :  { %368 = vmatpush.msra.mxu1 %v235_v55  ;;  %395 = vmatpush.msra.mxu2 %v268_v37  ;;  %v508_v37 = vand.u32 4294901760, %v507_v33 }
  0x23   :  { %432 = vmatpush.msra.mxu3 %v714_v10  ;;  %480 = vmatpush.msrb.mxu0 %v479_v31 }
  0x24   :  { %399 = vmatpush.msra.mxu2 %v274_v42  ;;  %509 = vmatpush.msrb.mxu1 %v508_v37 }
  0x25   :  { %434 = vmatpush.msra.mxu3 %v739_v32  ;;  %v451_v32 = vld [vmem:[%s801_s5] sm:$0xff] }
  0x26   :  { %403 = vmatpush.msra.mxu2 %v280_v48  ;;  %v481_v36 = vand.u32 4294901760, %v451_v32  ;;  %515 = vmatpush.msrb.mxu1 %v514_v41 }
  0x27   :  { %436 = vmatpush.msra.mxu3 %v745_v35  ;;  %v517_v35 = vsub.f32 %v452_v28, %v479_v31 }
  0x28   :  { %407 = vmatpush.msra.mxu2 %v286_v54  ;;  %v523_v40 = vsub.f32 %v451_v32, %v481_v36  ;;  %482 = vmatpush.msrb.mxu0 %v481_v36 }
  0x29   :  { %438 = vmatpush.msra.mxu3 %v229_v39  ;;  %v518_v39 = vand.u32 4294901760, %v517_v35 }
  0x2a   :  { %411 = vmatpush.msra.mxu2 %v292_v60  ;;  %v524_v43 = vand.u32 4294901760, %v523_v40 }
  0x2b   :  { %440 = vmatpush.msra.mxu3 %v231_v44  ;;  %v519_v42 = vsub.f32 %v517_v35, %v518_v39 }
  0x2c   :  { %415 = vmatpush.msra.mxu2 %v298_v62  ;;  %v525_v45 = vsub.f32 %v523_v40, %v524_v43 }
  0x2d   :  { %442 = vmatpush.msra.mxu3 %v233_v50  ;;  %v520_v44 = vand.u32 4294901760, %v519_v42 }
  0x2e   :  { %v526_v46 = vand.u32 4294901760, %v525_v45 }
  0x2f   :  { %444 = vmatpush.msra.mxu3 %v235_v55  ;;  %521 = vmatpush.msrb.mxu1 %v520_v44 }
  0x31   :  { %527 = vmatpush.msrb.mxu1 %v526_v46 }
  0x8b   :  { %v61_v4 = vpop.f32.mrf.mxu0 }
  0x8c   :  { %v62_v5 = vadd.f32 %v654_v3, %v61_v4  ;;  %v92_v6 = vpop.f32.mrf.mxu1  ;;  %v118_v7 = vpop.f32.mrf.mxu2  ;;  %v656_v3 = vld [vmem:[%s802_s6] ss:$0 sm:$0xff] }
  0x8d   :  { %v143_v9 = vpop.f32.mrf.mxu3 }
  0x8e   :  { %v93_v8 = vadd.f32 %v92_v6, %v62_v5 }
  0x90   :  { %v119_v10 = vadd.f32 %v118_v7, %v93_v8 }
  0x92   :  { %v144_v11 = vadd.f32 %v143_v9, %v119_v10 }
  0x93   :  { %v170_v12 = vpop.f32.mrf.mxu0 }
  0x94   :  { %v171_v13 = vadd.f32 %v170_v12, %v144_v11  ;;  %v193_v14 = vpop.f32.mrf.mxu1 }
  0x96   :  { %v194_v15 = vadd.f32 %v193_v14, %v171_v13 }
  0x98   :  { %v196_v16 = vmax.f32 %v194_v15, 0.0 }
  0x9a   :  { %v211_v17 = vsel %vm209_vm1, %v196_v16, 0 }
  0x9b   :  { %v237_v18 = vand.u32 4294901760, %v211_v17 }
  0x9d   :  { %v238_v19 = vsub.f32 %v211_v17, %v237_v18  ;;  %303 = vmatmul.f32.vlgmr.msrb.gmra.mxu3 %v237_v18 }
  0x9e   :  { %636 = vmatpush.msrb.mxu3 %v475_v24 }
  0x9f   :  { %341 = vmatmul.f32.vlgmr.msra.gmra.mxu0 %v238_v19  ;;  %v239_v20 = vand.u32 4294901760, %v238_v19 }
  0xa0   :  { %638 = vmatpush.msrb.mxu3 %v477_v27  ;;  %547 = vmatpush.msra.mxu0 %v505_v26 }
  0xa1   :  { %372 = vmatmul.f32.vlgmr.msra.gmra.mxu1 %v239_v20  ;;  %v240_v21 = vsub.f32 %v238_v19, %v239_v20 }
  0xa2   :  { %640 = vmatpush.msrb.mxu3 %v479_v31  ;;  %550 = vmatpush.msra.mxu0 %v511_v30 }
  0xa3   :  { %v241_v22 = vand.u32 4294901760, %v240_v21  ;;  %576 = vmatpush.msra.mxu1 %v475_v24 }
  0xa4   :  { %642 = vmatpush.msrb.mxu3 %v481_v36  ;;  %553 = vmatpush.msra.mxu0 %v517_v35 }
  0xa5   :  { %242 = vmatmul.f32.vlgmr.msrb.gmra.mxu2 %v241_v22  ;;  %446 = vmatmul.f32.vlgmr.msra.gmra.mxu3 %v237_v18 }
  0xa6   :  { %605 = vmatpush.msrb.mxu2 %v506_v29  ;;  %556 = vmatpush.msra.mxu0 %v523_v40 }
  0xa7   :  { %578 = vmatpush.msra.mxu1 %v477_v27 }
  0xa8   :  { %609 = vmatpush.msrb.mxu2 %v512_v34 }
  0xa9   :  { %580 = vmatpush.msra.mxu1 %v479_v31 }
  0xaa   :  { %613 = vmatpush.msrb.mxu2 %v518_v39 }
  0xab   :  { %582 = vmatpush.msra.mxu1 %v481_v36 }
  0xac   :  { %617 = vmatpush.msrb.mxu2 %v524_v43 }
  0xad   :  { %417 = vmatmul.f32.vlgmr.msra.gmra.mxu2 %v237_v18 }
 0x11c   :  { %v342_v52 = vpop.f32.mrf.mxu0 }
 0x11e   :  { %v373_v54 = vpop.f32.mrf.mxu1 }
 0x120   :  { %v304_v48 = vpop.f32.mrf.mxu3 }
 0x128   :  { %v243_v49 = vpop.f32.mrf.mxu2  ;;  %v447_v58 = vpop.f32.mrf.mxu3 }
 0x129   :  { %v244_v50 = vadd.f32 %v655_v47, %v243_v49 }
 0x12b   :  { %v305_v51 = vadd.f32 %v304_v48, %v244_v50 }
 0x12d   :  { %v343_v53 = vadd.f32 %v342_v52, %v305_v51 }
 0x12f   :  { %v374_v55 = vadd.f32 %v373_v54, %v343_v53 }
 0x130   :  { %v418_v56 = vpop.f32.mrf.mxu2 }
 0x131   :  { %v419_v57 = vadd.f32 %v418_v56, %v374_v55 }
 0x133   :  { %v448_v59 = vadd.f32 %v447_v58, %v419_v57 }
 0x135   :  { %v450_v60 = vmax.f32 %v448_v59, 0.0 }
 0x137   :  { %v461_v61 = vsel %vm459_vm2, %v450_v60, 0 }
 0x138   :  { %v483_v62 = vand.u32 4294901760, %v461_v61 }
 0x13a   :  { %v484_v63 = vsub.f32 %v461_v61, %v483_v62  ;;  %529 = vmatmul.f32.vlgmr.msrb.gmra.mxu1 %v483_v62  ;;  %619 = vmatmul.f32.vlgmr.msrb.gmra.mxu2 %v483_v62 }
 0x13b   :  { %644 = vmatmul.f32.vlgmr.msrb.gmra.mxu3 %v483_v62 }
 0x13c   :  { %v485_v0 = vand.u32 4294901760, %v484_v63 }
 0x13e   :  { %v486_v1 = vsub.f32 %v484_v63, %v485_v0 }
 0x140   :  { %v487_v2 = vand.u32 4294901760, %v486_v1 }
 0x142   :  { %488 = vmatmul.f32.vlgmr.msrb.gmra.mxu0 %v487_v2  ;;  %586 = vmatmul.f32.vlgmr.msra.gmra.mxu1 %v485_v0 }
 0x14a   :  { %559 = vmatmul.f32.vlgmr.msra.gmra.mxu0 %v484_v63 }
 0x1b7   :  { %v530_v4 = vpop.f32.mrf.mxu1 }
 0x1bd   :  { %v620_v12 = vpop.f32.mrf.mxu2 }
 0x1be   :  { %v645_v14 = vpop.f32.mrf.mxu3 }
 0x1bf   :  { %v489_v5 = vpop.f32.mrf.mxu0  ;;  %v587_v10 = vpop.f32.mrf.mxu1 }
 0x1c0   :  { %v490_v6 = vadd.f32 %v656_v3, %v489_v5 }
 0x1c2   :  { %v531_v7 = vadd.f32 %v530_v4, %v490_v6 }
 0x1c7   :  { %v560_v8 = vpop.f32.mrf.mxu0 }
 0x1c8   :  { %v561_v9 = vadd.f32 %v560_v8, %v531_v7 }
 0x1ca   :  { %v588_v11 = vadd.f32 %v587_v10, %v561_v9 }
 0x1cc   :  { %v621_v13 = vadd.f32 %v620_v12, %v588_v11 }
 0x1ce   :  { %v646_v15 = vadd.f32 %v645_v14, %v621_v13 }
 0x1d0   :  { %649 = vst.msk [vmem:[%s803_s7] sm:$0xff] %vm648_vm3, %v646_v15 }

</bundles_post_ra>
